<compile_context>
chip_gen: v7x
topology: tpu7x:2x2x1
jax: 0.10.0
libtpu: 0.0.40
codegen_flags: <defaults>
</compile_context>

<pallas_src>
import functools

import jax
import jax.numpy as jnp
from jax import lax
from jax.experimental import pallas as pl
from jax.experimental.pallas import tpu as pltpu


def _focal_loss_kernel(x_ref, t_ref, at_ref, o_ref, *, gamma, inv_norm, hw, thw):
    # x_ref:  (1, C, THW) logits tile (any float dtype; cast to f32 in-kernel)
    # t_ref:  (1, 1, THW) int32 target classes
    # at_ref: (1, 1, THW) f32 alpha[target]
    # o_ref:  (1, 1)      f32 running scalar accumulator (resident across grid)
    n = pl.program_id(0)
    j = pl.program_id(1)
    is_first = jnp.logical_and(n == 0, j == 0)
    is_last = jnp.logical_and(
        n == pl.num_programs(0) - 1, j == pl.num_programs(1) - 1
    )

    @pl.when(is_first)
    def _():
        o_ref[...] = jnp.zeros_like(o_ref)

    logits = x_ref[0].astype(jnp.float32)  # (C, THW)
    tgt = t_ref[0]                         # (1, THW) int32
    at = at_ref[0]                         # (1, THW) f32
    C = logits.shape[0]

    # log-softmax over the class (sublane) axis, with the target gather fused
    # into z so the full (C, THW) logp tensor is never materialized.
    m = jnp.max(logits, axis=0, keepdims=True)                    # (1, THW)
    z = logits - m                                                # (C, THW)
    lse = jnp.log(jnp.sum(jnp.exp(z), axis=0, keepdims=True))     # (1, THW)
    cls = lax.broadcasted_iota(jnp.int32, (C, thw), 0)            # (C, THW)
    zt = jnp.sum(jnp.where(cls == tgt, z, 0.0), axis=0, keepdims=True)
    logpt = zt - lse                                              # (1, THW)
    pt = jnp.exp(logpt)

    one_m_pt = 1.0 - pt
    if float(gamma) == int(gamma):
        focal = lax.integer_pow(one_m_pt, int(gamma))             # VPU only
    else:
        focal = jnp.maximum(one_m_pt, 0.0) ** gamma               # clamp -> no NaN
    loss = -focal * (logpt * at)                                  # (1, THW)

    # Mask out padded columns of the last HW tile.
    col = j * thw + lax.broadcasted_iota(jnp.int32, (1, thw), 1)
    loss = jnp.where(col < hw, loss, 0.0)

    o_ref[...] += jnp.sum(loss)

    @pl.when(is_last)
    def _():
        o_ref[...] *= inv_norm


def _choose_thw(hw, c, itemsize):
    """Largest lane tile (multiple of 128) whose double-buffered inputs fit ~12 MiB."""
    LANE = 128
    MAX_THW = 8192
    budget = 6 * 1024 * 1024                      # bytes for ONE set of input blocks
    per_col = c * itemsize + 4 + 4                # logits col + target + alpha
    thw = max(LANE, (budget // (2 * per_col)) // LANE * LANE)
    thw = min(thw, MAX_THW)
    if hw <= thw:
        return hw                                  # single tile; equals full extent
    return thw                                     # multiple of 128


def focal_loss(inp, target, *, gamma=2, alpha=0.25, size_average=True):
    """Pallas implementation of FocalLoss.forward.

    inp:    (N, C) or (N, C, H, W) float logits
    target: (N,) or (N, H, W) integer class indices
    """
    # --- alpha setup (matches the PyTorch module) ---
    if isinstance(alpha, (float, int)):
        alpha_arr = jnp.array([alpha, 1.0 - alpha], dtype=jnp.float32)
    elif isinstance(alpha, (list, tuple)):
        alpha_arr = jnp.array(alpha, dtype=jnp.float32)
    else:
        alpha_arr = jnp.asarray(alpha, dtype=jnp.float32)

    # --- layout: (N, C, HW), HW lane-dense, NO XLA transpose for NCHW inputs ---
    if inp.ndim > 2:
        N, C = inp.shape[0], inp.shape[1]
        x = inp.reshape(N, C, -1)                       # pure view, contiguous
        t = target.reshape(N, 1, -1).astype(jnp.int32)  # (N, 1, HW)
    else:
        # 2D case: small tensor; a cheap transpose makes the batch lane-dense.
        N0, C = inp.shape
        x = inp.T.reshape(1, C, N0)
        t = target.reshape(1, 1, -1).astype(jnp.int32)
    N, C, HW = x.shape
    M_total = N * HW

    # Hoisted alpha gather (per-pixel weight).  NOTE: out-of-range target
    # classes clamp to the last alpha entry (PyTorch's gather would error).
    at = jnp.take(alpha_arr, t, axis=0).astype(jnp.float32)  # (N, 1, HW)

    itemsize = jnp.dtype(x.dtype).itemsize
    THW = _choose_thw(HW, C, itemsize)
    n_hw = pl.cdiv(HW, THW)

    inv_norm = (1.0 / M_total) if size_average else 1.0
    kernel = functools.partial(
        _focal_loss_kernel,
        gamma=float(gamma),
        inv_norm=float(inv_norm),
        hw=HW,
        thw=THW,
    )

    out = pl.pallas_call(
        kernel,
        out_shape=jax.ShapeDtypeStruct((1, 1), jnp.float32),
        grid=(N, n_hw),
        in_specs=[
            pl.BlockSpec((1, C, THW), lambda n, j: (n, 0, j)),  # logits tile
            pl.BlockSpec((1, 1, THW), lambda n, j: (n, 0, j)),  # targets tile
            pl.BlockSpec((1, 1, THW), lambda n, j: (n, 0, j)),  # alpha[target] tile
        ],
        out_specs=pl.BlockSpec((1, 1), lambda n, j: (0, 0)),    # resident accumulator
        compiler_params=pltpu.CompilerParams(
            dimension_semantics=("arbitrary", "arbitrary"),
            vmem_limit_bytes=32 * 1024 * 1024,
        ),
    )(x, t, at)
    return out[0, 0]


def _focal_loss_ref(inp, target, gamma=2, alpha=0.25, size_average=True):
    """Pure-JAX reference mirroring the PyTorch forward."""
    if isinstance(alpha, (float, int)):
        alpha_arr = jnp.array([alpha, 1.0 - alpha], dtype=jnp.float32)
    else:
        alpha_arr = jnp.asarray(alpha, dtype=jnp.float32)
    if inp.ndim > 2:
        N, C = inp.shape[0], inp.shape[1]
        x = inp.reshape(N, C, -1).transpose(0, 2, 1).reshape(-1, C)
    else:
        x = inp
    x = x.astype(jnp.float32)
    t = target.reshape(-1).astype(jnp.int32)
    logp = jax.nn.log_softmax(x, axis=1)
    logpt = jnp.take_along_axis(logp, t[:, None], axis=1)[:, 0]
    pt = jnp.exp(logpt)
    at = alpha_arr[t]
    loss = -((1.0 - pt) ** gamma) * (logpt * at)
    return loss.mean() if size_average else loss.sum()


if __name__ == "__main__":
    key = jax.random.PRNGKey(0)
    kx, kt = jax.random.split(key)

    # NCHW logits: batch=2, channels(classes)=4, spatial=16x16
    x = jax.random.normal(kx, (2, 4, 16, 16), dtype=jnp.float32)
    # default alpha=0.25 -> alpha tensor [0.25, 0.75]; targets must be in {0, 1}
    target = jax.random.randint(kt, (2, 16, 16), 0, 2, dtype=jnp.int32)

    loss = focal_loss(x, target, gamma=2, alpha=0.25, size_average=True)
    loss = jax.block_until_ready(loss)

    ref = _focal_loss_ref(x, target, gamma=2, alpha=0.25, size_average=True)
    assert jnp.allclose(loss, ref, atol=1e-5, rtol=1e-5), (loss, ref)

    # also exercise the sum reduction path
    loss_sum = jax.block_until_ready(
        focal_loss(x, target, gamma=2, alpha=0.25, size_average=False)
    )
    ref_sum = _focal_loss_ref(x, target, gamma=2, alpha=0.25, size_average=False)
    assert jnp.allclose(loss_sum, ref_sum, atol=1e-4, rtol=1e-5), (loss_sum, ref_sum)

    print("KERNEL_OK")
</pallas_src>

<mosaic_0001>
module attributes {stable_mosaic.version = 11 : i64} {
  func.func @_focal_loss_kernel(%arg0: i32, %arg1: i32, %arg2: memref<1x4x256xf32, #tpu.memory_space<vmem>>, %arg3: memref<1x1x256xi32, #tpu.memory_space<vmem>>, %arg4: memref<1x1x256xf32, #tpu.memory_space<vmem>>, %arg5: memref<1x1xf32, #tpu.memory_space<vmem>>) attributes {dimension_semantics = [#tpu.dimension_semantics<arbitrary>, #tpu.dimension_semantics<arbitrary>], iteration_bounds = array<i64: 2, 1>, scalar_prefetch = 0 : i64, scratch_operands = 0 : i64, tpu.core_type = #tpu.core_type<tc>, window_params = [{transform_indices = @transform_0, window_bounds = array<i64: 1, 4, 256>}, {transform_indices = @transform_1, window_bounds = array<i64: 1, 1, 256>}, {transform_indices = @transform_2, window_bounds = array<i64: 1, 1, 256>}, {pipeline_mode = #tpu.pipeline_mode<synchronous>, transform_indices = @transform_3, window_bounds = array<i64: 1, 1>}]} {
    %c0_i32 = arith.constant 0 : i32
    %0 = arith.cmpi eq, %arg0, %c0_i32 : i32
    %c0_i32_0 = arith.constant 0 : i32
    %1 = arith.cmpi eq, %arg1, %c0_i32_0 : i32
    %2 = arith.andi %0, %1 : i1
    %c1_i32 = arith.constant 1 : i32
    %3 = arith.cmpi eq, %arg0, %c1_i32 : i32
    %c0_i32_1 = arith.constant 0 : i32
    %4 = arith.cmpi eq, %arg1, %c0_i32_1 : i32
    %5 = arith.andi %3, %4 : i1
    %6 = arith.extui %2 : i1 to i32
    %c0_i32_2 = arith.constant 0 : i32
    %7 = arith.cmpi ne, %6, %c0_i32_2 : i32
    scf.if %7 {
      %cst_24 = arith.constant 0.000000e+00 : f32
      %56 = vector.broadcast %cst_24 : f32 to vector<1x1xf32>
      %c0_25 = arith.constant 0 : index
      %c0_26 = arith.constant 0 : index
      %57 = vector.load %arg5[%c0_25, %c0_26] : memref<1x1xf32, #tpu.memory_space<vmem>>, vector<1x1xf32>
      tpu.vector_store %arg5[%c0_25, %c0_26], %56 {strides = array<i32>} : memref<1x1xf32, #tpu.memory_space<vmem>>, vector<1x1xf32>,
    } else {
    }
    %c0 = arith.constant 0 : index
    %c0_3 = arith.constant 0 : index
    %c0_4 = arith.constant 0 : index
    %8 = vector.load %arg2[%c0, %c0_3, %c0_4] : memref<1x4x256xf32, #tpu.memory_space<vmem>>, vector<1x4x256xf32>
    %9 = vector.shape_cast %8 : vector<1x4x256xf32> to vector<4x256xf32>
    %c0_5 = arith.constant 0 : index
    %c0_6 = arith.constant 0 : index
    %c0_7 = arith.constant 0 : index
    %10 = vector.load %arg3[%c0_5, %c0_6, %c0_7] : memref<1x1x256xi32, #tpu.memory_space<vmem>>, vector<1x1x256xi32>
    %11 = vector.shape_cast %10 : vector<1x1x256xi32> to vector<1x256xi32>
    %c0_8 = arith.constant 0 : index
    %c0_9 = arith.constant 0 : index
    %c0_10 = arith.constant 0 : index
    %12 = vector.load %arg4[%c0_8, %c0_9, %c0_10] : memref<1x1x256xf32, #tpu.memory_space<vmem>>, vector<1x1x256xf32>
    %13 = vector.shape_cast %12 : vector<1x1x256xf32> to vector<1x256xf32>
    %cst = arith.constant dense<0xFF800000> : vector<256xf32>
    %14 = vector.multi_reduction <maximumf>, %9, %cst [0] : vector<4x256xf32> to vector<256xf32>
    %15 = vector.shape_cast %14 : vector<256xf32> to vector<1x256xf32>
    %16 = vector.broadcast %15 : vector<1x256xf32> to vector<4x256xf32>
    %17 = arith.subf %9, %16 : vector<4x256xf32>
    %18 = math.exp %17 : vector<4x256xf32>
    %cst_11 = arith.constant dense<0.000000e+00> : vector<256xf32>
    %19 = vector.multi_reduction <add>, %18, %cst_11 [0] : vector<4x256xf32> to vector<256xf32>
    %20 = vector.shape_cast %19 : vector<256xf32> to vector<1x256xf32>
    %21 = math.log %20 : vector<1x256xf32>
    %22 = tpu.iota {dimensions = array<i32: 0>} : vector<4x256xi32>
    %23 = vector.broadcast %11 : vector<1x256xi32> to vector<4x256xi32>
    %24 = arith.cmpi eq, %22, %23 : vector<4x256xi32>
    %cst_12 = arith.constant 0.000000e+00 : f32
    %25 = vector.broadcast %cst_12 : f32 to vector<4x256xf32>
    %26 = arith.select %24, %17, %25 : vector<4x256xi1>, vector<4x256xf32>
    %cst_13 = arith.constant dense<0.000000e+00> : vector<256xf32>
    %27 = vector.multi_reduction <add>, %26, %cst_13 [0] : vector<4x256xf32> to vector<256xf32>
    %28 = vector.shape_cast %27 : vector<256xf32> to vector<1x256xf32>
    %29 = arith.subf %28, %21 : vector<1x256xf32>
    %30 = math.exp %29 : vector<1x256xf32>
    %cst_14 = arith.constant 1.000000e+00 : f32
    %31 = vector.broadcast %cst_14 : f32 to vector<1x256xf32>
    %32 = arith.subf %31, %30 : vector<1x256xf32>
    %33 = arith.mulf %32, %32 : vector<1x256xf32>
    %cst_15 = arith.constant 0.000000e+00 : f32
    %34 = vector.broadcast %cst_15 : f32 to vector<1x256xf32>
    %35 = arith.subf %34, %33 : vector<1x256xf32>
    %36 = arith.mulf %29, %13 : vector<1x256xf32>
    %37 = arith.mulf %35, %36 : vector<1x256xf32>
    %c256_i32 = arith.constant 256 : i32
    %38 = arith.muli %arg1, %c256_i32 : i32
    %39 = tpu.iota {dimensions = array<i32: 1>} : vector<1x256xi32>
    %40 = vector.broadcast %38 : i32 to vector<1x256xi32>
    %41 = arith.addi %40, %39 : vector<1x256xi32>
    %c256_i32_16 = arith.constant 256 : i32
    %42 = vector.broadcast %c256_i32_16 : i32 to vector<1x256xi32>
    %43 = arith.cmpi slt, %41, %42 : vector<1x256xi32>
    %cst_17 = arith.constant 0.000000e+00 : f32
    %44 = vector.broadcast %cst_17 : f32 to vector<1x256xf32>
    %45 = arith.select %43, %37, %44 : vector<1x256xi1>, vector<1x256xf32>
    %c0_18 = arith.constant 0 : index
    %c0_19 = arith.constant 0 : index
    %46 = vector.load %arg5[%c0_18, %c0_19] : memref<1x1xf32, #tpu.memory_space<vmem>>, vector<1x1xf32>
    %47 = vector.shape_cast %45 : vector<1x256xf32> to vector<1x1x256xf32>
    %cst_20 = arith.constant dense<0.000000e+00> : vector<1xf32>
    %48 = vector.multi_reduction <add>, %47, %cst_20 [1, 2] : vector<1x1x256xf32> to vector<1xf32>
    %49 = vector.shape_cast %48 : vector<1xf32> to vector<1x1x1xf32>
    %50 = vector.extract %49[0, 0, 0] : f32 from vector<1x1x1xf32>
    %51 = vector.broadcast %50 : f32 to vector<1x1xf32>
    %52 = arith.addf %46, %51 : vector<1x1xf32>
    %c0_21 = arith.constant 0 : index
    %c0_22 = arith.constant 0 : index
    %53 = vector.load %arg5[%c0_21, %c0_22] : memref<1x1xf32, #tpu.memory_space<vmem>>, vector<1x1xf32>
    tpu.vector_store %arg5[%c0_21, %c0_22], %52 {strides = array<i32>} : memref<1x1xf32, #tpu.memory_space<vmem>>, vector<1x1xf32>,
    %54 = arith.extui %5 : i1 to i32
    %c0_i32_23 = arith.constant 0 : i32
    %55 = arith.cmpi ne, %54, %c0_i32_23 : i32
    scf.if %55 {
      %c0_24 = arith.constant 0 : index
      %c0_25 = arith.constant 0 : index
      %56 = vector.load %arg5[%c0_24, %c0_25] : memref<1x1xf32, #tpu.memory_space<vmem>>, vector<1x1xf32>
      %cst_26 = arith.constant 0.001953125 : f32
      %57 = vector.broadcast %cst_26 : f32 to vector<1x1xf32>
      %58 = arith.mulf %56, %57 : vector<1x1xf32>
      %c0_27 = arith.constant 0 : index
      %c0_28 = arith.constant 0 : index
      %59 = vector.load %arg5[%c0_27, %c0_28] : memref<1x1xf32, #tpu.memory_space<vmem>>, vector<1x1xf32>
      tpu.vector_store %arg5[%c0_27, %c0_28], %58 {strides = array<i32>} : memref<1x1xf32, #tpu.memory_space<vmem>>, vector<1x1xf32>,
    } else {
    }
    return
  }
  func.func @transform_0(%arg0: i32, %arg1: i32) -> (i32, i32, i32) {
    %c0_i32 = arith.constant 0 : i32
    %c0_i32_0 = arith.constant 0 : i32
    return %arg0, %c0_i32, %arg1 : i32, i32, i32
  }
  func.func @transform_1(%arg0: i32, %arg1: i32) -> (i32, i32, i32) {
    %c0_i32 = arith.constant 0 : i32
    %c0_i32_0 = arith.constant 0 : i32
    return %arg0, %c0_i32, %arg1 : i32, i32, i32
  }
  func.func @transform_2(%arg0: i32, %arg1: i32) -> (i32, i32, i32) {
    %c0_i32 = arith.constant 0 : i32
    %c0_i32_0 = arith.constant 0 : i32
    return %arg0, %c0_i32, %arg1 : i32, i32, i32
  }
  func.func @transform_3(%arg0: i32, %arg1: i32) -> (i32, i32) {
    %c0_i32 = arith.constant 0 : i32
    %c0_i32_0 = arith.constant 0 : i32
    %c0_i32_1 = arith.constant 0 : i32
    return %c0_i32, %c0_i32_0 : i32, i32
  }
}

</mosaic_0001>

<bundles_post_ra>
// kernel: tpu_custom_call.1
= control target key start
LH: loop header
LB: loop body
LE: loop exit
PB: predicated region body
PF: predicated region fallthrough
CT: control target
= control target key end

     0   :  { %8 = vsyncpa [#allocation3], 0  ;;  %s1016_s0 = inlined_call_operand.hbm [shape: f32[2,4,256], index: 0, kind: input, shape index: {}]   ;;  %s1017_s1 = inlined_call_operand.hbm [shape: s32[2,1,256], index: 1, kind: input, shape index: {}]   ;;  %s1018_s2 = inlined_call_operand.vmem [shape: f32[2,1,256], index: 2, kind: input, shape index: {}]   ;;  %s1019_s3 = inlined_call_operand.hbm [shape: f32[1,1], index: 3, kind: output, shape index: {}]  }
   0x1   :  { %10 = vsyncpa [#allocation3 + $0x1], 0 }
   0x2   :  { %11 = vsyncpa [#allocation6], 0 }
   0x3   :  { %13 = vsyncpa [#allocation6 + $0x1], 0 }
   0x4   :  { %14 = vsyncpa [#allocation4], 0  ;;  %s804_s12 = smov 0   ;;  %s806_s13 = smov 0  }
   0x5   :  { %s808_s14 = smov 0   ;;  %s810_s15 = smov 0  }
   0x6   :  { %s812_s16 = smov 0   ;;  %s814_s17 = smov 0  }
   0x7 LB: > { %s530_s18 = sadd.s32 4294967295, %s778_s17   ;;  %s32_s19 = sadd.s32 1, %s774_s16  ;;  %s778_s17 = sphi %s814_s17, %s20_s17   ;;  %s774_s16 = sphi %s812_s16, %s1034_s16   ;;  %s770_s15 = sphi %s810_s15, %s1033_s15   ;;  %s766_s14 = sphi %s808_s14, %s1032_s14   ;;  %s762_s13 = sphi %s806_s13, %s1031_s13   ;;  %s758_s12 = sphi %s804_s12, %s1030_s12  }
   0x8   : > { %p34_p0 = scmp.ge.s32.totalorder %s32_s19, 2  ;;  %s41_s20 = sadd.s32 1, %s766_s14 }
   0x9   : > { %p48_p1 = scmp.ne.s32.totalorder %s766_s14, %s762_s13  ;;  %p49_p2 = scmp.eq.s32.totalorder %s778_s17, 0 }
   0xa   : > { %s1036_s19 = smov (%p34_p0, %s32_s19), 0  ;;  %p54_p4 = scmp.ne.s32.totalorder %s762_s13, %s758_s12 }
   0xb   : > { %p840_p3 = por %p49_p2, %p48_p1  ;;  %s36_s22 = ssub.s32 %s774_s16, %s1036_s19 }
   0xc   : > { %p55_p5 = scmp.eq.s32.totalorder %s530_s18, 0  ;;  %p39_p6 = scmp.eq.s32.totalorder %s36_s22, 0 }
   0xd   : > { %p570_p8 = scmp.lt.s32.totalorder %s778_s17, 2  ;;  %s858_s25 = sand.u32 1, %s766_s14  }
   0xe   : > { %p849_p7 = por %p55_p5, %p54_p4  ;;  %s549_s26 = sshll.u32 %s774_s16, 7 }
   0xf   : > { %s855_s24 = scalar_select %p39_p6, %s766_s14, %s41_s20  }
  0x10   : > { %s1022_s23 = scalar_select %p849_p7, 1, 0 }
  0x11   : > { %s533_s27 = sshll.u32 %s858_s25, 3  ;;  %s865_s30 = scalar_lea.hbm %s1016_s0, %s549_s26 }
  0x12   : > { %s159_s4 = scalar_lea.vmem [#allocation2], %s533_s27  ;;  %p869_p9 = pnand %p570_p8, %p840_p3 }
  0x13   : > { %s169_s5 = sshll.u32 %s159_s4, 4  ;;  %s156_s7 = scalar_lea.sflag [#allocation3], %s858_s25  ;;  %s873_s5 = int_to_ptr.vmem [resolvable:$true] %s169_s5 }
  0x14   : > { %s634_s8 = scalar_lea.hbm %s865_s30, 128  ;;  %p636_p13 = pneg %p869_p9 }
  0x15   : > { %p635_p12 = scmp.ne.s32.totalorder %s865_s30, %s634_s8  ;;  %s639_s11 = scalar_lea.hbm %s1016_s0, 256 }
  0x16   : > { %p640_p2 = scmp.lt.u32.totalorder %s865_s30, %s1016_s0  ;;  %p641_p3 = scmp.lt.u32.totalorder %s639_s11, %s634_s8 }
  0x17   : > { %p637_p0 = pnand %p636_p13, %p635_p12  ;;  %p643_p5 = scmp.lt.u32.totalorder %s634_s8, %s865_s30 }
  0x18   : > { %p642_p4 = por %p641_p3, %p640_p2 }
  0x19   : > { %p638_p1 = pneg %p637_p0 }
  0x1a   : > { %p644_p6 = por %p643_p5, %p642_p4 }
  0x1c   : > { %p645_p8 = pnand %p644_p6, %p638_p1 }
  0x1e   : > { %648 = shalt.err (!%p645_p8)
}
  0x1f   : > { %s649_s21 = scalar_lea.vmem %s873_s5, 128  ;;  %s780_s22 = smov [#allocation2]  }
  0x20   : > { %p650_p12 = scmp.ne.s32.totalorder %s873_s5, %s649_s21  ;;  %s654_s26 = sshll.u32 %s780_s22, 4  ;;  %s655_s26 = int_to_ptr.vmem [resolvable:$false] %s654_s26 }
  0x21   : > { %s656_s27 = scalar_lea.vmem %s655_s26, 256  ;;  %p657_p11 = scmp.lt.s32.totalorder %s873_s5, %s655_s26 }
  0x22   : > { %p652_p0 = pnand %p650_p12, %p636_p13  ;;  %p658_p2 = scmp.lt.s32.totalorder %s656_s27, %s649_s21 }
  0x24   : > { %p653_p10 = pneg %p652_p0  ;;  %p659_p3 = por %p658_p2, %p657_p11 }
  0x26   : > { %p660_p4 = pnand %p659_p3, %p653_p10 }
  0x28   : > { %663 = shalt.err (!%p660_p4)
}
  0x29   : > { %566 = dma.hbm_to_vmem [thread:$0]  (!%p869_p9), %s865_s30, 128, %s873_s5, %s156_s7  }
  0x2a   : > { %p1024_p1 = scmp.lt.s32.totalorder %s778_s17, 3  ;;  %p1025_p5 = scmp.ge.s32.totalorder %s778_s17, 1 }
  0x2b   : > { %s536_s29 = sshll.u32 %s858_s25, 1  ;;  %s550_s4 = sshll.u32 %s774_s16, 5 }
  0x2c   : > { %p907_p6 = pnand %p1025_p5, %p1024_p1  ;;  %s916_s10 = scalar_lea.hbm %s1017_s1, %s550_s4 }
  0x2d   : > { %s180_s11 = scalar_lea.vmem [#allocation5], %s536_s29  ;;  %s177_s30 = scalar_lea.sflag [#allocation6], %s858_s25 }
  0x2e   : > { %s1026_s28 = scalar_select %p907_p6, 1, 0 }
  0x2f   : > { %s190_s12 = sshll.u32 %s180_s11, 4  ;;  %s664_s5 = scalar_lea.hbm %s916_s10, 32  ;;  %s191_s12 = int_to_ptr.vmem [resolvable:$true] %s190_s12 }
  0x30   : > { %p665_p10 = scmp.ne.s32.totalorder %s916_s10, %s664_s5  ;;  %s669_s21 = scalar_lea.hbm %s1017_s1, 64 }
  0x31   : > { %p670_p12 = scmp.lt.u32.totalorder %s916_s10, %s1017_s1  ;;  %p671_p0 = scmp.lt.u32.totalorder %s669_s21, %s664_s5 }
  0x32   : > { %p667_p11 = pnand %p665_p10, %p636_p13  ;;  %p673_p3 = scmp.lt.u32.totalorder %s664_s5, %s916_s10 }
  0x33   : > { %p672_p2 = por %p671_p0, %p670_p12 }
  0x34   : > { %p668_p8 = pneg %p667_p11 }
  0x35   : > { %p674_p4 = por %p673_p3, %p672_p2 }
  0x37   : > { %p675_p1 = pnand %p674_p4, %p668_p8 }
  0x39   : > { %678 = shalt.err (!%p675_p1)
}
  0x3a   : > { %s679_s25 = scalar_lea.vmem %s191_s12, 32  ;;  %s781_s27 = smov [#allocation5]  }
  0x3b   : > { %p680_p5 = scmp.ne.s32.totalorder %s191_s12, %s679_s25  ;;  %s684_s29 = sshll.u32 %s781_s27, 4  ;;  %s685_s29 = int_to_ptr.vmem [resolvable:$false] %s684_s29 }
  0x3c   : > { %s686_s4 = scalar_lea.vmem %s685_s29, 64  ;;  %p687_p7 = scmp.lt.s32.totalorder %s191_s12, %s685_s29 }
  0x3d   : > { %p682_p10 = pnand %p680_p5, %p636_p13  ;;  %p688_p6 = scmp.lt.s32.totalorder %s686_s4, %s679_s25 }
  0x3f   : > { %p683_p11 = pneg %p682_p10  ;;  %p689_p0 = por %p688_p6, %p687_p7 }
  0x41   : > { %p690_p12 = pnand %p689_p0, %p683_p11 }
  0x43   : > { %693 = shalt.err (!%p690_p12)
}
  0x44   : > { %569 = dma.hbm_to_vmem [thread:$0]  (!%p869_p9), %s916_s10, 32, %s191_s12, %s177_s30  }
  0x45   : > { %p1027_p8 = scmp.ne.s32.totalorder %s1026_s28, 0 }
  0x46   : > { %s213_s8 = sand.u32 (!%p1027_p8), 1, %s762_s13   ;;  %p1028_p13 = scmp.ne.s32.totalorder (!%p1027_p8), %s1022_s23, 0 }
  0x47   : > { %211 = sbr.rel (%p1027_p8) target bundleno = 422 (0x1a6), region = 32  ;;  %s540_s9 = sshll.u32 (!%p1027_p8), %s213_s8, 3 }
  0x48   : > { %s214_s11 = scalar_lea.sflag (!%p1027_p8), [#allocation3], %s213_s8  ;;  %s217_s5 = scalar_lea.vmem (!%p1027_p8), [#allocation2], %s540_s9 }
  0x4e   : > { %745 = dma.done.wait (%p1028_p13), %s214_s11, 128  }
  0x4f   : > { %747 = vsyncadd (%p1028_p13), %s214_s11, 4294967168  ;;  %s541_s7 = sshll.u32 %s213_s8, 1  ;;  %s223_s20 = scalar_lea.sflag [#allocation6], %s213_s8 }
  0x50   : > { %s945_s6 = scalar_lea.vmem [#allocation5], %s541_s7 }
  0x51   : > { %749 = dma.done.wait (%p1028_p13), %s223_s20, 32  }
  0x52   : > { %751 = vsyncadd (%p1028_p13), %s223_s20, 4294967264  ;;  %p260_p7 = scmp.lt.s32.totalorder %s770_s15, 1  ;;  %p268_p9 = scmp.eq.s32.totalorder %s770_s15, 0 }
  0x53   : > { %p272_p6 = scmp.eq.s32.totalorder %s770_s15, 1  ;;  %vm277_vm0 = vcmask (%p268_p9), 0   ;;  %v782_v0 = vmov (%p268_p9), 0.0  }
  0x54   : > { %s261_s28 = scalar_select %p260_p7, %s770_s15, 1 }
  0x55   : > { %276 = sbr.rel (!%p268_p9) target bundleno = 92 (0x5c), region = 44  ;;  %278 = vst.msk [vmem:[#allocation7] sm:$0x1] (%p268_p9), %vm277_vm0, %v782_v0 }
  0x56   : > { %s542_s10 = sshll.u32 %s261_s28, 1 }
  0x57   : > { %s958_s21 = scalar_lea.vmem %s1018_s2, %s542_s10 }
  0x5c PF: > { %v279_v1 = vld [vmem:[%s217_s5] sm:$0xff]  ;;  %vm285_vm1 = vcmask 1043456   ;;  %v328_v14 = vlaneseq  ;;  %v280_v22 = vld [vmem:[%s945_s6] sm:$0x3]  ;;  %vm398_vm4 = vcmask 1040384   ;;  %vm413_vm5 = vcmask 0  }
  0x5d   : > { %v283_v2 = vcombine.high %v279_v1, %v279_v1  ;;  %v286_v3 = vsel %vm285_vm1, %v279_v1, -inf }
  0x5e   : > { %v287_v4 = vrot.slane %v286_v3, 4  ;;  %v329_v18 = vshrl.u32 %v328_v14, 7 }
  0x5f   : > { %v293_v5 = vsel %vm285_vm1, %v283_v2, -inf }
  0x60   : > { %v288_v6 = vmax.f32 %v286_v3, %v287_v4  ;;  %v294_v7 = vrot.slane %v293_v5, 4  ;;  %v332_v21 = vsub.s32 0, %v329_v18  ;;  %v336_v24 = vsub.s32 1, %v329_v18  ;;  %v281_v4 = vld [vmem:[%s958_s21] sm:$0x3] }
  0x62   : > { %v289_v8 = vrot.slane %v288_v6, 2  ;;  %v295_v9 = vmax.f32 %v293_v5, %v294_v7  ;;  %v333_v25 = vrot.slane %v280_v22, %v332_v21  ;;  %v337_v26 = vrot.slane %v280_v22, %v336_v24 }
  0x63   : > { %v375_v5 = vrot.slane %v281_v4, %v332_v21 }
  0x64   : > { %v290_v10 = vmax.f32 %v288_v6, %v289_v8  ;;  %v296_v11 = vrot.slane %v295_v9, 2  ;;  %vm338_vm2 = vcmp.eq.s32.totalorder %v329_v18, %v333_v25  ;;  %vm339_vm3 = vcmp.eq.s32.totalorder %v329_v18, %v337_v26 }
  0x65   : > { %v379_v8 = vrot.slane %v281_v4, %v336_v24 }
  0x66   : > { %v291_v12 = vrot.slane %v290_v10, 1  ;;  %v297_v13 = vmax.f32 %v295_v9, %v296_v11 }
  0x68   : > { %v292_v15 = vmax.f32 %v290_v10, %v291_v12  ;;  %v298_v16 = vrot.slane %v297_v13, 1 }
  0x6a   : > { %v299_v17 = vmax.f32 %v297_v13, %v298_v16 }
  0x6c   : > { %v302_v19 = vcombine.low %v292_v15, %v299_v17 }
  0x6e   : > { %v304_v20 = vsub.f32 %v279_v1, %v302_v19 }
  0x70   : > { %v305_v23 = vmul.f32 1.442695, %v304_v20  ;;  %v341_v27 = vcombine.high %v304_v20, %v304_v20  ;;  %v343_v28 = vsel %vm338_vm2, %v304_v20, 0.0 }
  0x71   : > { %v345_v31 = vsel %vm285_vm1, %v343_v28, 0.0 }
  0x72   : > { %624 = vpow2.f32 %v305_v23  ;;  %v344_v29 = vsel %vm339_vm3, %v341_v27, 0.0  ;;  %v346_v37 = vrot.slane %v345_v31, 4 }
  0x73   : > { %v352_v35 = vsel %vm285_vm1, %v344_v29, 0.0  ;;  %v397_v29 = vld [vmem:[#allocation7] sm:$0x1] }
  0x74   : > { %v353_v40 = vrot.slane %v352_v35, 4  ;;  %v347_v43 = vadd.f32 %v346_v37, %v345_v31 }
  0x76   : > { %v354_v46 = vadd.f32 %v353_v40, %v352_v35  ;;  %v348_v49 = vrot.slane %v347_v43, 2 }
  0x78   : > { %v355_v52 = vrot.slane %v354_v46, 2  ;;  %v349_v54 = vadd.f32 %v348_v49, %v347_v43 }
  0x7a   : > { %v356_v55 = vadd.f32 %v355_v52, %v354_v46  ;;  %v350_v56 = vrot.slane %v349_v54, 1 }
  0x7c   : > { %v625_v30 = vpop.eup %624  ;;  %v357_v57 = vrot.slane %v356_v55, 1  ;;  %v351_v58 = vadd.f32 %v350_v56, %v349_v54 }
  0x7d   : > { %v308_v32 = vcombine.high %v625_v30, %v625_v30  ;;  %v310_v33 = vsel %vm285_vm1, %v625_v30, 0.0 }
  0x7e   : > { %v311_v34 = vrot.slane %v310_v33, 4  ;;  %v358_v61 = vadd.f32 %v357_v57, %v356_v55 }
  0x7f   : > { %v317_v36 = vsel %vm285_vm1, %v308_v32, 0.0 }
  0x80   : > { %v312_v38 = vadd.f32 %v311_v34, %v310_v33  ;;  %v318_v39 = vrot.slane %v317_v36, 4 }
  0x82   : > { %v313_v41 = vrot.slane %v312_v38, 2  ;;  %v319_v42 = vadd.f32 %v318_v39, %v317_v36 }
  0x84   : > { %v314_v44 = vadd.f32 %v313_v41, %v312_v38  ;;  %v320_v45 = vrot.slane %v319_v42, 2 }
  0x86   : > { %v315_v47 = vrot.slane %v314_v44, 1  ;;  %v321_v48 = vadd.f32 %v320_v45, %v319_v42 }
  0x88   : > { %v316_v50 = vadd.f32 %v315_v47, %v314_v44  ;;  %v322_v51 = vrot.slane %v321_v48, 1 }
  0x8a   : > { %v323_v53 = vadd.f32 %v322_v51, %v321_v48  ;;  %626 = vlog2.f32 %v316_v50 }
  0x8c   : > { %628 = vlog2.f32 %v323_v53 }
  0x94   : > { %v627_v59 = vpop.eup %626 }
  0x95   : > { %v325_v60 = vmul.f32 0.6931472, %v627_v59 }
  0x96   : > { %v629_v62 = vpop.eup %628 }
  0x97   : > { %v327_v63 = vmul.f32 0.6931472, %v629_v62  ;;  %v359_v0 = vsub.f32 %v351_v58, %v325_v60 }
  0x99   : > { %v360_v1 = vsub.f32 %v358_v61, %v327_v63  ;;  %v361_v2 = vmul.f32 1.442695, %v359_v0  ;;  %v382_v12 = vmul.f32 %v375_v5, %v359_v0 }
  0x9b   : > { %630 = vpow2.f32 %v361_v2  ;;  %v363_v3 = vmul.f32 1.442695, %v360_v1  ;;  %v383_v15 = vmul.f32 %v379_v8, %v360_v1 }
  0x9d   : > { %632 = vpow2.f32 %v363_v3 }
  0xa5   : > { %v631_v6 = vpop.eup %630 }
  0xa6   : > { %v365_v7 = vsub.f32 1.0, %v631_v6 }
  0xa7   : > { %v633_v9 = vpop.eup %632 }
  0xa8   : > { %v366_v10 = vsub.f32 1.0, %v633_v9  ;;  %v367_v11 = vmul.f32 %v365_v7, %v365_v7 }
  0xaa   : > { %v368_v13 = vmul.f32 %v366_v10, %v366_v10  ;;  %v369_v14 = vsub.f32 0.0, %v367_v11 }
  0xac   : > { %v370_v16 = vsub.f32 0.0, %v368_v13  ;;  %v384_v17 = vmul.f32 %v382_v12, %v369_v14 }
  0xae   : > { %v385_v18 = vmul.f32 %v383_v15, %v370_v16  ;;  %v399_v19 = vsel %vm398_vm4, %v384_v17, 0.0 }
  0xb0   : > { %v400_v20 = vsel %vm398_vm4, %v385_v18, 0.0 }
  0xb1   : > { %v401_v22 = vadd.f32 %v400_v20, %v399_v19 }
  0xb3   : > { %402 = vadd.xlane.f32.xlu0 %v401_v22 }
 0x140   : > { %v403_v23 = vpop.xlane.xlu0 %402 }
 0x141   : > { %v404_v21 = vrot.slane %v403_v23, 4 }
 0x143   : > { %v405_v25 = vadd.f32 %v404_v21, %v403_v23 }
 0x145   : > { %v406_v26 = vrot.slane %v405_v25, 2 }
 0x147   : > { %v407_v24 = vadd.f32 %v406_v26, %v405_v25 }
 0x149   : > { %v408_v27 = vrot.slane %v407_v24, 1 }
 0x14b   : > { %v409_v28 = vadd.f32 %v408_v27, %v407_v24 }
 0x14d   : > { %553 = vpush %v409_v28 }
 0x17c   : > { %416 = sbr.rel (!%p272_p6) target bundleno = 397 (0x18d), region = 48 }
 0x17e   : > { %s554_s23 = spop %553 }
 0x17f   : > { %v411_v30 = vstv %s554_s23 }
 0x180   : > { %v412_v31 = vadd.f32 %v411_v30, %v397_v29 }
 0x182   : > { %414 = vst.msk [vmem:[#allocation7] sm:$0x1] %vm413_vm5, %v412_v31 }
 0x189   : > { %v417_v32 = vld [vmem:[#allocation7] sm:$0x1] }
 0x18a   : > { %v418_v33 = vmul.f32 0.001953125, %v417_v32 }
 0x18c   : > { %419 = vst.msk [vmem:[#allocation7] sm:$0x1] %vm413_vm5, %v418_v33 }
 0x18d PF: > { %p972_p2 = scmp.eq.s32.totalorder %s530_s18, 1  ;;  %s783_s26 = smov [#allocation7]  }
 0x18e   : > { %s427_s25 = sshll.u32 %s783_s26, 4  ;;  %s428_s25 = int_to_ptr.vmem [resolvable:$true] %s427_s25 }
 0x18f   : > { %s694_s27 = scalar_lea.vmem %s428_s25, 16  ;;  %s700_s15 = scalar_lea.vmem %s428_s25, 32 }
 0x190   : > { %p695_p3 = scmp.ne.s32.totalorder %s428_s25, %s694_s27  ;;  %p701_p5 = scmp.lt.s32.totalorder %s428_s25, %s428_s25 }
 0x191   : > { %p702_p10 = scmp.lt.s32.totalorder %s700_s15, %s694_s27 }
 0x192   : > { %p696_p4 = pnand %p695_p3, %p972_p2 }
 0x193   : > { %p703_p11 = por %p702_p10, %p701_p5 }
 0x194   : > { %p697_p1 = pneg %p696_p4 }
 0x196   : > { %p704_p0 = pnand %p703_p11, %p697_p1 }
 0x198   : > { %707 = shalt.err (!%p704_p0)
}
 0x199   : > { %s708_s4 = scalar_lea.hbm %s1019_s3, 16 }
 0x19a   : > { %p709_p12 = scmp.ne.s32.totalorder %s1019_s3, %s708_s4  ;;  %p714_p7 = scmp.lt.u32.totalorder %s708_s4, %s1019_s3 }
 0x19c   : > { %p710_p8 = pnand %p709_p12, %p972_p2 }
 0x19e   : > { %p711_p13 = pneg %p710_p8 }
 0x1a0   : > { %p716_p9 = pnand %p714_p7, %p711_p13 }
 0x1a2   : > { %719 = shalt.err (!%p716_p9)
}
 0x1a3   : > { %560 = dma.vmem_to_hbm [thread:$0]  (%p972_p2), %s428_s25, 16, %s1019_s3, [#allocation4]  }
 0x1a4   : > { %753 = dma.done.wait (%p972_p2), [#allocation4], 16  }
 0x1a5   : > { %755 = vsyncadd (%p972_p2), [#allocation4], 4294967280 }
 0x1a6 PF: > { %s20_s17 = sadd.s32 1, %s778_s17   ;;  %s1030_s12 = smov %s762_s13 }
 0x1a7   : > { %p17_p6 = scmp.ge.s32.totalorder %s20_s17, 4   ;;  %s1031_s13 = smov %s766_s14 }
 0x1a8   : > { %s1032_s14 = smov %s855_s24  ;;  %s1033_s15 = smov %s774_s16 }
 0x1a9   : > { %s1034_s16 = smov %s1036_s19  ;;  %19 = sbr.rel (!%p17_p6) target bundleno = 7 (0x7), region = 93 }
 0x1b0   :  { %440 = vsyncpa [#allocation3], 1 }
 0x1b1   :  { %442 = vsyncpa [#allocation3 + $0x1], 1 }
 0x1b2   :  { %443 = vsyncpa [#allocation6], 1 }
 0x1b3   :  { %445 = vsyncpa [#allocation6 + $0x1], 1 }
 0x1b4   :  { %446 = vsyncpa [#allocation4], 1 }
 0x1b5   :  { %448 = vsyncpa [#allocation4 + $0x1], 1 }

</bundles_post_ra>
